<compile_context>
chip_gen: v6e
topology: v6e:2x2x1
jax: 0.10.0
libtpu: 0.0.40
codegen_flags: <defaults>
</compile_context>

<pallas_src>
import functools

import numpy as np
import jax
import jax.numpy as jnp
from jax.experimental import pallas as pl
from jax.experimental.pallas import tpu as pltpu


def _round_up(x: int, m: int) -> int:
    return ((x + m - 1) // m) * m


def _num_tensorcores() -> int:
    """Best-effort TensorCores-per-chip (2 on megacore-style parts, else 1)."""
    try:
        info = pltpu.get_tpu_info()
        for name in ("num_cores", "core_count", "num_tensorcores",
                     "tensorcore_count"):
            v = getattr(info, name, None)
            if isinstance(v, int) and 1 <= v <= 4:
                return v
    except Exception:
        pass
    try:
        kind = jax.devices()[0].device_kind.lower()
        if ("7" in kind) or ("v4" in kind) or ("v5p" in kind):
            return 2
    except Exception:
        pass
    return 1


def _ce_kernel(logits_ref, tgt_ref, out_ref, *, inv_n):
    """One grid step of one CE term.

    logits_ref: [C, TR, 128]  source dtype (f32/bf16), class-major
    tgt_ref:    [TR, 128]     int32 class ids; padding columns carry -1
    out_ref:    [8, 128]      f32 lane/sublane-dense partial-sum accumulator,
                              resident across the inner (arbitrary) grid axis
    inv_n:      python float  1 / N_term (torch 'mean' over all elements)
    """
    num_classes = logits_ref.shape[0]

    @pl.when(pl.program_id(1) == 0)
    def _init():
        out_ref[...] = jnp.zeros_like(out_ref)

    t = tgt_ref[...]                                        # [TR, 128] int32

    # Full (8,128)-dense per-class planes; upcast in-kernel so HBM traffic
    # stays in the source dtype.
    rows = [logits_ref[c].astype(jnp.float32) for c in range(num_classes)]

    # Log-sum-exp over the tiny static class dim: pure elementwise VPU/EUP
    # work on full vregs, no cross-lane reduce.
    m = rows[0]
    for r in rows[1:]:
        m = jnp.maximum(m, r)
    sum_exp = jnp.exp(rows[0] - m)
    for r in rows[1:]:
        sum_exp = sum_exp + jnp.exp(r - m)
    lse = m + jnp.log(sum_exp)                              # [TR, 128]

    # Gather the target logit with selects (no one-hot matmul).  Out-of-range
    # labels silently fall back to class 0 (torch would raise); padding (-1)
    # is masked below.
    picked = rows[0]
    for c in range(1, num_classes):
        picked = jnp.where(t == c, rows[c], picked)

    weight = (t >= 0).astype(jnp.float32) * inv_n           # 0 on padding
    loss = (lse - picked) * weight                          # [TR, 128]

    # Fold into the resident [8, 128] accumulator via a reshape-sum: the
    # [TR,128] -> [TR//8, 8, 128] view is layout-trivial and the reduction is
    # a short chain of full-vreg adds.
    out_ref[...] = out_ref[...] + jnp.sum(loss.reshape(-1, 8, 128), axis=0)


def _ce_mean_pallas(logits, targets, *, tile_rows, num_slabs,
                    vmem_limit_bytes=32 * 1024 * 1024):
    """Mean cross-entropy of one term via a single pallas_call."""
    c = int(logits.shape[-1])
    lg = logits.reshape(-1, c)                              # [N, C]
    tg = targets.reshape(-1).astype(jnp.int32)              # [N]
    n = int(lg.shape[0])
    inv_n = 1.0 / float(n)                                  # torch 'mean' denom

    # Packed view: N columns -> [M, 128] rows (lane-dense).
    m_total = max(1, -(-n // 128))
    tr = max(8, min(int(tile_rows), _round_up(-(-m_total // num_slabs), 8)))
    tr = _round_up(tr, 8)
    chunk = num_slabs * tr
    m_pad = _round_up(m_total, chunk)
    nb = m_pad // chunk
    n_pad = m_pad * 128

    pad = n_pad - n
    # Single fused relayout per term: transpose to class-major, pad, reshape.
    # TODO(synk): emit class-major logits in the producer to drop this copy.
    lg_cm = lg.T                                            # [C, N]
    if pad:
        lg_cm = jnp.pad(lg_cm, ((0, 0), (0, pad)))
        tg = jnp.pad(tg, (0, pad), constant_values=-1)      # -1 => masked
    lg_cm = lg_cm.reshape(c, m_pad, 128)
    tg2 = tg.reshape(m_pad, 128)

    kernel = functools.partial(_ce_kernel, inv_n=inv_n)
    partials = pl.pallas_call(
        kernel,
        out_shape=jax.ShapeDtypeStruct((num_slabs, 8, 128), jnp.float32),
        grid_spec=pltpu.PrefetchScalarGridSpec(
            num_scalar_prefetch=0,
            grid=(num_slabs, nb),
            in_specs=[
                pl.BlockSpec((c, tr, 128), lambda s, i: (0, s * nb + i, 0)),
                pl.BlockSpec((tr, 128), lambda s, i: (s * nb + i, 0)),
            ],
            out_specs=pl.BlockSpec((None, 8, 128), lambda s, i: (s, 0, 0)),
        ),
        compiler_params=pltpu.CompilerParams(
            # Slab axis shards across TensorCores on multi-TC chips; the inner
            # axis carries the resident accumulator -> arbitrary.
            dimension_semantics=("parallel", "arbitrary"),
            vmem_limit_bytes=vmem_limit_bytes,
        ),
    )(lg_cm, tg2)
    return jnp.sum(partials)


def tplinker_loss(entities, pre_entities, rel_heads, pre_rel_heads,
                  rel_tails, pre_rel_tails, *, tile_rows=1024, num_slabs=None):
    """Sum of three mean cross-entropy losses (TPLinkerLoss.forward)."""
    if num_slabs is None:
        num_slabs = _num_tensorcores()
    ce = functools.partial(_ce_mean_pallas, tile_rows=tile_rows,
                           num_slabs=num_slabs)
    return (ce(pre_entities, entities)
            + ce(pre_rel_heads, rel_heads)
            + ce(pre_rel_tails, rel_tails))


def _reference_loss(entities, pre_entities, rel_heads, pre_rel_heads,
                    rel_tails, pre_rel_tails):
    """Pure-JAX reference: sum of three mean cross-entropy losses."""
    def ce(logits, targets):
        lg = logits.reshape(-1, logits.shape[-1]).astype(jnp.float32)
        tg = targets.reshape(-1).astype(jnp.int32)
        lse = jax.scipy.special.logsumexp(lg, axis=-1)
        picked = jnp.take_along_axis(lg, tg[:, None], axis=-1)[:, 0]
        return jnp.mean(lse - picked)

    return (ce(pre_entities, entities) + ce(pre_rel_heads, rel_heads)
            + ce(pre_rel_tails, rel_tails))


if __name__ == "__main__":
    key = jax.random.PRNGKey(0)
    k1, k2, k3, k4, k5, k6 = jax.random.split(key, 6)

    batch, seq, num_rel = 2, 32, 4
    pairs = seq * (seq + 1) // 2            # TPLinker "shaking sequence" length

    entities = jax.random.randint(k1, (batch, pairs), 0, 2)
    pre_entities = jax.random.normal(k2, (batch, pairs, 2), jnp.float32)
    rel_heads = jax.random.randint(k3, (batch, num_rel, pairs), 0, 3)
    pre_rel_heads = jax.random.normal(k4, (batch, num_rel, pairs, 3), jnp.float32)
    rel_tails = jax.random.randint(k5, (batch, num_rel, pairs), 0, 3)
    pre_rel_tails = jax.random.normal(k6, (batch, num_rel, pairs, 3), jnp.float32)

    ref = jax.block_until_ready(
        _reference_loss(entities, pre_entities, rel_heads, pre_rel_heads,
                        rel_tails, pre_rel_tails))

    # 1) Default (large-tile, chip-auto num_slabs) configuration.
    loss_default = jax.block_until_ready(
        jax.jit(tplinker_loss)(entities, pre_entities, rel_heads,
                               pre_rel_heads, rel_tails, pre_rel_tails))
    np.testing.assert_allclose(np.asarray(loss_default), np.asarray(ref),
                               rtol=1e-5, atol=1e-5)

    # 2) Tiny tiles + 2 slabs so the multi-step resident accumulator and the
    #    parallel slab axis are both exercised at these small shapes.
    loss_small = jax.block_until_ready(
        jax.jit(functools.partial(tplinker_loss, tile_rows=8, num_slabs=2))(
            entities, pre_entities, rel_heads, pre_rel_heads,
            rel_tails, pre_rel_tails))
    np.testing.assert_allclose(np.asarray(loss_small), np.asarray(ref),
                               rtol=1e-5, atol=1e-5)

    print("KERNEL_OK")
</pallas_src>

<mosaic_0001>
module attributes {stable_mosaic.version = 11 : i64} {
  func.func @_ce_kernel(%arg0: i32, %arg1: i32, %arg2: memref<3x40x128xf32, #tpu.memory_space<vmem>>, %arg3: memref<40x128xi32, #tpu.memory_space<vmem>>, %arg4: memref<1x8x128xf32, #tpu.memory_space<vmem>>) attributes {dimension_semantics = [#tpu.dimension_semantics<parallel>, #tpu.dimension_semantics<arbitrary>], iteration_bounds = array<i64: 1, 1>, scalar_prefetch = 0 : i64, scratch_operands = 0 : i64, tpu.core_type = #tpu.core_type<tc>, window_params = [{transform_indices = @transform_0, window_bounds = array<i64: 3, 40, 128>}, {transform_indices = @transform_1, window_bounds = array<i64: 40, 128>}, {transform_indices = @transform_2, window_bounds = array<i64: 1, 8, 128>}]} {
    %c0_i32 = arith.constant 0 : i32
    %0 = arith.cmpi eq, %arg1, %c0_i32 : i32
    %1 = arith.extui %0 : i1 to i32
    %c0_i32_0 = arith.constant 0 : i32
    %2 = arith.cmpi ne, %1, %c0_i32_0 : i32
    scf.if %2 {
      %cst_17 = arith.constant 0.000000e+00 : f32
      %44 = vector.broadcast %cst_17 : f32 to vector<8x128xf32>
      %c0_18 = arith.constant 0 : index
      %c0_19 = arith.constant 0 : index
      %c0_20 = arith.constant 0 : index
      %45 = vector.load %arg4[%c0_18, %c0_19, %c0_20] : memref<1x8x128xf32, #tpu.memory_space<vmem>>, vector<1x8x128xf32>
      %46 = vector.shape_cast %45 : vector<1x8x128xf32> to vector<8x128xf32>
      %47 = vector.shape_cast %44 : vector<8x128xf32> to vector<1x8x128xf32>
      tpu.vector_store %arg4[%c0_18, %c0_19, %c0_20], %47 {strides = array<i32>} : memref<1x8x128xf32, #tpu.memory_space<vmem>>, vector<1x8x128xf32>,
    } else {
    }
    %c0 = arith.constant 0 : index
    %c0_1 = arith.constant 0 : index
    %3 = vector.load %arg3[%c0, %c0_1] : memref<40x128xi32, #tpu.memory_space<vmem>>, vector<40x128xi32>
    %c0_2 = arith.constant 0 : index
    %c0_3 = arith.constant 0 : index
    %c0_4 = arith.constant 0 : index
    %4 = vector.load %arg2[%c0_2, %c0_3, %c0_4] : memref<3x40x128xf32, #tpu.memory_space<vmem>>, vector<1x40x128xf32>
    %5 = vector.shape_cast %4 : vector<1x40x128xf32> to vector<40x128xf32>
    %c1 = arith.constant 1 : index
    %c0_5 = arith.constant 0 : index
    %c0_6 = arith.constant 0 : index
    %6 = vector.load %arg2[%c1, %c0_5, %c0_6] : memref<3x40x128xf32, #tpu.memory_space<vmem>>, vector<1x40x128xf32>
    %7 = vector.shape_cast %6 : vector<1x40x128xf32> to vector<40x128xf32>
    %c2 = arith.constant 2 : index
    %c0_7 = arith.constant 0 : index
    %c0_8 = arith.constant 0 : index
    %8 = vector.load %arg2[%c2, %c0_7, %c0_8] : memref<3x40x128xf32, #tpu.memory_space<vmem>>, vector<1x40x128xf32>
    %9 = vector.shape_cast %8 : vector<1x40x128xf32> to vector<40x128xf32>
    %10 = arith.maximumf %5, %7 : vector<40x128xf32>
    %11 = arith.maximumf %10, %9 : vector<40x128xf32>
    %12 = arith.subf %5, %11 : vector<40x128xf32>
    %13 = math.exp %12 : vector<40x128xf32>
    %14 = arith.subf %7, %11 : vector<40x128xf32>
    %15 = math.exp %14 : vector<40x128xf32>
    %16 = arith.addf %13, %15 : vector<40x128xf32>
    %17 = arith.subf %9, %11 : vector<40x128xf32>
    %18 = math.exp %17 : vector<40x128xf32>
    %19 = arith.addf %16, %18 : vector<40x128xf32>
    %20 = math.log %19 : vector<40x128xf32>
    %21 = arith.addf %11, %20 : vector<40x128xf32>
    %c1_i32 = arith.constant 1 : i32
    %22 = vector.broadcast %c1_i32 : i32 to vector<40x128xi32>
    %23 = arith.cmpi eq, %3, %22 : vector<40x128xi32>
    %24 = arith.select %23, %7, %5 : vector<40x128xi1>, vector<40x128xf32>
    %c2_i32 = arith.constant 2 : i32
    %25 = vector.broadcast %c2_i32 : i32 to vector<40x128xi32>
    %26 = arith.cmpi eq, %3, %25 : vector<40x128xi32>
    %27 = arith.select %26, %9, %24 : vector<40x128xi1>, vector<40x128xf32>
    %c0_i32_9 = arith.constant 0 : i32
    %28 = vector.broadcast %c0_i32_9 : i32 to vector<40x128xi32>
    %29 = arith.cmpi sge, %3, %28 : vector<40x128xi32>
    %30 = arith.extui %29 : vector<40x128xi1> to vector<40x128xi32>
    %31 = arith.sitofp %30 : vector<40x128xi32> to vector<40x128xf32>
    %cst = arith.constant 2.36742431E-4 : f32
    %32 = vector.broadcast %cst : f32 to vector<40x128xf32>
    %33 = arith.mulf %31, %32 : vector<40x128xf32>
    %34 = arith.subf %21, %27 : vector<40x128xf32>
    %35 = arith.mulf %34, %33 : vector<40x128xf32>
    %c0_10 = arith.constant 0 : index
    %c0_11 = arith.constant 0 : index
    %c0_12 = arith.constant 0 : index
    %36 = vector.load %arg4[%c0_10, %c0_11, %c0_12] : memref<1x8x128xf32, #tpu.memory_space<vmem>>, vector<1x8x128xf32>
    %37 = vector.shape_cast %36 : vector<1x8x128xf32> to vector<8x128xf32>
    %38 = vector.shape_cast %35 : vector<40x128xf32> to vector<5x8x128xf32>
    %cst_13 = arith.constant dense<0.000000e+00> : vector<8x128xf32>
    %39 = vector.multi_reduction <add>, %38, %cst_13 [0] : vector<5x8x128xf32> to vector<8x128xf32>
    %40 = arith.addf %37, %39 : vector<8x128xf32>
    %c0_14 = arith.constant 0 : index
    %c0_15 = arith.constant 0 : index
    %c0_16 = arith.constant 0 : index
    %41 = vector.load %arg4[%c0_14, %c0_15, %c0_16] : memref<1x8x128xf32, #tpu.memory_space<vmem>>, vector<1x8x128xf32>
    %42 = vector.shape_cast %41 : vector<1x8x128xf32> to vector<8x128xf32>
    %43 = vector.shape_cast %40 : vector<8x128xf32> to vector<1x8x128xf32>
    tpu.vector_store %arg4[%c0_14, %c0_15, %c0_16], %43 {strides = array<i32>} : memref<1x8x128xf32, #tpu.memory_space<vmem>>, vector<1x8x128xf32>,
    return
  }
  func.func @transform_0(%arg0: i32, %arg1: i32) -> (i32, i32, i32) {
    %c1_i32 = arith.constant 1 : i32
    %0 = arith.muli %arg0, %c1_i32 : i32
    %1 = arith.addi %0, %arg1 : i32
    %c0_i32 = arith.constant 0 : i32
    %c0_i32_0 = arith.constant 0 : i32
    %c0_i32_1 = arith.constant 0 : i32
    return %c0_i32, %1, %c0_i32_0 : i32, i32, i32
  }
  func.func @transform_1(%arg0: i32, %arg1: i32) -> (i32, i32) {
    %c1_i32 = arith.constant 1 : i32
    %0 = arith.muli %arg0, %c1_i32 : i32
    %1 = arith.addi %0, %arg1 : i32
    %c0_i32 = arith.constant 0 : i32
    %c0_i32_0 = arith.constant 0 : i32
    return %1, %c0_i32 : i32, i32
  }
  func.func @transform_2(%arg0: i32, %arg1: i32) -> (i32, i32, i32) {
    %c0_i32 = arith.constant 0 : i32
    %c0_i32_0 = arith.constant 0 : i32
    %c0_i32_1 = arith.constant 0 : i32
    return %arg0, %c0_i32, %c0_i32_0 : i32, i32, i32
  }
}

module attributes {stable_mosaic.version = 11 : i64} {
  func.func @_ce_kernel(%arg0: i32, %arg1: i32, %arg2: memref<2x16x128xf32, #tpu.memory_space<vmem>>, %arg3: memref<16x128xi32, #tpu.memory_space<vmem>>, %arg4: memref<1x8x128xf32, #tpu.memory_space<vmem>>) attributes {dimension_semantics = [#tpu.dimension_semantics<parallel>, #tpu.dimension_semantics<arbitrary>], iteration_bounds = array<i64: 1, 1>, scalar_prefetch = 0 : i64, scratch_operands = 0 : i64, tpu.core_type = #tpu.core_type<tc>, window_params = [{transform_indices = @transform_0, window_bounds = array<i64: 2, 16, 128>}, {transform_indices = @transform_1, window_bounds = array<i64: 16, 128>}, {transform_indices = @transform_2, window_bounds = array<i64: 1, 8, 128>}]} {
    %c0_i32 = arith.constant 0 : i32
    %0 = arith.cmpi eq, %arg1, %c0_i32 : i32
    %1 = arith.extui %0 : i1 to i32
    %c0_i32_0 = arith.constant 0 : i32
    %2 = arith.cmpi ne, %1, %c0_i32_0 : i32
    scf.if %2 {
      %cst_15 = arith.constant 0.000000e+00 : f32
      %35 = vector.broadcast %cst_15 : f32 to vector<8x128xf32>
      %c0_16 = arith.constant 0 : index
      %c0_17 = arith.constant 0 : index
      %c0_18 = arith.constant 0 : index
      %36 = vector.load %arg4[%c0_16, %c0_17, %c0_18] : memref<1x8x128xf32, #tpu.memory_space<vmem>>, vector<1x8x128xf32>
      %37 = vector.shape_cast %36 : vector<1x8x128xf32> to vector<8x128xf32>
      %38 = vector.shape_cast %35 : vector<8x128xf32> to vector<1x8x128xf32>
      tpu.vector_store %arg4[%c0_16, %c0_17, %c0_18], %38 {strides = array<i32>} : memref<1x8x128xf32, #tpu.memory_space<vmem>>, vector<1x8x128xf32>,
    } else {
    }
    %c0 = arith.constant 0 : index
    %c0_1 = arith.constant 0 : index
    %3 = vector.load %arg3[%c0, %c0_1] : memref<16x128xi32, #tpu.memory_space<vmem>>, vector<16x128xi32>
    %c0_2 = arith.constant 0 : index
    %c0_3 = arith.constant 0 : index
    %c0_4 = arith.constant 0 : index
    %4 = vector.load %arg2[%c0_2, %c0_3, %c0_4] : memref<2x16x128xf32, #tpu.memory_space<vmem>>, vector<1x16x128xf32>
    %5 = vector.shape_cast %4 : vector<1x16x128xf32> to vector<16x128xf32>
    %c1 = arith.constant 1 : index
    %c0_5 = arith.constant 0 : index
    %c0_6 = arith.constant 0 : index
    %6 = vector.load %arg2[%c1, %c0_5, %c0_6] : memref<2x16x128xf32, #tpu.memory_space<vmem>>, vector<1x16x128xf32>
    %7 = vector.shape_cast %6 : vector<1x16x128xf32> to vector<16x128xf32>
    %8 = arith.maximumf %5, %7 : vector<16x128xf32>
    %9 = arith.subf %5, %8 : vector<16x128xf32>
    %10 = math.exp %9 : vector<16x128xf32>
    %11 = arith.subf %7, %8 : vector<16x128xf32>
    %12 = math.exp %11 : vector<16x128xf32>
    %13 = arith.addf %10, %12 : vector<16x128xf32>
    %14 = math.log %13 : vector<16x128xf32>
    %15 = arith.addf %8, %14 : vector<16x128xf32>
    %c1_i32 = arith.constant 1 : i32
    %16 = vector.broadcast %c1_i32 : i32 to vector<16x128xi32>
    %17 = arith.cmpi eq, %3, %16 : vector<16x128xi32>
    %18 = arith.select %17, %7, %5 : vector<16x128xi1>, vector<16x128xf32>
    %c0_i32_7 = arith.constant 0 : i32
    %19 = vector.broadcast %c0_i32_7 : i32 to vector<16x128xi32>
    %20 = arith.cmpi sge, %3, %19 : vector<16x128xi32>
    %21 = arith.extui %20 : vector<16x128xi1> to vector<16x128xi32>
    %22 = arith.sitofp %21 : vector<16x128xi32> to vector<16x128xf32>
    %cst = arith.constant 9.46969725E-4 : f32
    %23 = vector.broadcast %cst : f32 to vector<16x128xf32>
    %24 = arith.mulf %22, %23 : vector<16x128xf32>
    %25 = arith.subf %15, %18 : vector<16x128xf32>
    %26 = arith.mulf %25, %24 : vector<16x128xf32>
    %c0_8 = arith.constant 0 : index
    %c0_9 = arith.constant 0 : index
    %c0_10 = arith.constant 0 : index
    %27 = vector.load %arg4[%c0_8, %c0_9, %c0_10] : memref<1x8x128xf32, #tpu.memory_space<vmem>>, vector<1x8x128xf32>
    %28 = vector.shape_cast %27 : vector<1x8x128xf32> to vector<8x128xf32>
    %29 = vector.shape_cast %26 : vector<16x128xf32> to vector<2x8x128xf32>
    %cst_11 = arith.constant dense<0.000000e+00> : vector<8x128xf32>
    %30 = vector.multi_reduction <add>, %29, %cst_11 [0] : vector<2x8x128xf32> to vector<8x128xf32>
    %31 = arith.addf %28, %30 : vector<8x128xf32>
    %c0_12 = arith.constant 0 : index
    %c0_13 = arith.constant 0 : index
    %c0_14 = arith.constant 0 : index
    %32 = vector.load %arg4[%c0_12, %c0_13, %c0_14] : memref<1x8x128xf32, #tpu.memory_space<vmem>>, vector<1x8x128xf32>
    %33 = vector.shape_cast %32 : vector<1x8x128xf32> to vector<8x128xf32>
    %34 = vector.shape_cast %31 : vector<8x128xf32> to vector<1x8x128xf32>
    tpu.vector_store %arg4[%c0_12, %c0_13, %c0_14], %34 {strides = array<i32>} : memref<1x8x128xf32, #tpu.memory_space<vmem>>, vector<1x8x128xf32>,
    return
  }
  func.func @transform_0(%arg0: i32, %arg1: i32) -> (i32, i32, i32) {
    %c1_i32 = arith.constant 1 : i32
    %0 = arith.muli %arg0, %c1_i32 : i32
    %1 = arith.addi %0, %arg1 : i32
    %c0_i32 = arith.constant 0 : i32
    %c0_i32_0 = arith.constant 0 : i32
    %c0_i32_1 = arith.constant 0 : i32
    return %c0_i32, %1, %c0_i32_0 : i32, i32, i32
  }
  func.func @transform_1(%arg0: i32, %arg1: i32) -> (i32, i32) {
    %c1_i32 = arith.constant 1 : i32
    %0 = arith.muli %arg0, %c1_i32 : i32
    %1 = arith.addi %0, %arg1 : i32
    %c0_i32 = arith.constant 0 : i32
    %c0_i32_0 = arith.constant 0 : i32
    return %1, %c0_i32 : i32, i32
  }
  func.func @transform_2(%arg0: i32, %arg1: i32) -> (i32, i32, i32) {
    %c0_i32 = arith.constant 0 : i32
    %c0_i32_0 = arith.constant 0 : i32
    %c0_i32_1 = arith.constant 0 : i32
    return %arg0, %c0_i32, %c0_i32_0 : i32, i32, i32
  }
}

</mosaic_0001>

<bundles_post_ra>
// kernel: tplinker_loss.4
= control target key start
LH: loop header
LB: loop body
LE: loop exit
PB: predicated region body
PF: predicated region fallthrough
CT: control target
= control target key end

     0   :  { %s481_s0 = inlined_call_operand.vmem [shape: f32[3,40,128], index: 0, kind: input, shape index: {}]   ;;  %s482_s1 = inlined_call_operand.vmem [shape: s32[40,128], index: 1, kind: input, shape index: {}]   ;;  %s483_s2 = inlined_call_operand.vmem [shape: f32[1,8,128], index: 2, kind: output, shape index: {}]  }
   0x1   :  { %v310_v0 = vld [vmem:[%s481_s0] sm:$0xff]  ;;  %v315_v1 = vld [vmem:[%s481_s0 + $0x8] sm:$0xff]  ;;  %v320_v2 = vld [vmem:[%s481_s0 + $0x10] sm:$0xff] }
   0x2   :  { %v325_v3 = vld [vmem:[%s481_s0 + $0x18] sm:$0xff]  ;;  %v330_v4 = vld [vmem:[%s481_s0 + $0x20] sm:$0xff]  ;;  %v335_v5 = vld [vmem:[%s481_s0 + $0x28] sm:$0xff] }
   0x3   :  { %v340_v6 = vld [vmem:[%s481_s0 + $0x30] sm:$0xff]  ;;  %v345_v7 = vld [vmem:[%s481_s0 + $0x38] sm:$0xff]  ;;  %v350_v8 = vld [vmem:[%s481_s0 + $0x40] sm:$0xff]  ;;  %v82_v10 = vmax.f32 %v310_v0, %v335_v5 }
   0x4   :  { %v355_v9 = vld [vmem:[%s481_s0 + $0x48] sm:$0xff]  ;;  %v83_v11 = vmax.f32 %v315_v1, %v340_v6  ;;  %v364_v12 = vld [vmem:[%s481_s0 + $0x50] sm:$0xff]  ;;  %v369_v13 = vld [vmem:[%s481_s0 + $0x58] sm:$0xff]  ;;  %v84_v15 = vmax.f32 %v320_v2, %v345_v7  ;;  %v85_v16 = vmax.f32 %v325_v3, %v350_v8 }
   0x5   :  { %v374_v14 = vld [vmem:[%s481_s0 + $0x60] sm:$0xff]  ;;  %v86_v17 = vmax.f32 %v330_v4, %v355_v9  ;;  %v385_v18 = vld [vmem:[%s481_s0 + $0x68] sm:$0xff]  ;;  %v390_v19 = vld [vmem:[%s481_s0 + $0x70] sm:$0xff]  ;;  %v393_v20 = vmax.f32 %v82_v10, %v364_v12 }
   0x6   :  { %v396_v21 = vmax.f32 %v83_v11, %v369_v13  ;;  %v399_v22 = vmax.f32 %v84_v15, %v374_v14  ;;  %v402_v23 = vmax.f32 %v85_v16, %v385_v18 }
   0x7   :  { %v405_v24 = vmax.f32 %v86_v17, %v390_v19  ;;  %v92_v25 = vsub.f32 %v310_v0, %v393_v20  ;;  %v107_v30 = vsub.f32 %v335_v5, %v393_v20  ;;  %v127_v42 = vsub.f32 %v364_v12, %v393_v20 }
   0x8   :  { %v93_v26 = vsub.f32 %v315_v1, %v396_v21  ;;  %v94_v27 = vsub.f32 %v320_v2, %v399_v22  ;;  %v95_v28 = vsub.f32 %v325_v3, %v402_v23  ;;  %v108_v33 = vsub.f32 %v340_v6, %v396_v21 }
   0x9   :  { %v96_v29 = vsub.f32 %v330_v4, %v405_v24  ;;  %v97_v31 = vmul.f32 1.442695, %v92_v25  ;;  %v109_v36 = vsub.f32 %v345_v7, %v399_v22  ;;  %v110_v38 = vsub.f32 %v350_v8, %v402_v23 }
   0xa   :  { %v99_v32 = vmul.f32 1.442695, %v93_v26  ;;  %v101_v34 = vmul.f32 1.442695, %v94_v27  ;;  %v103_v35 = vmul.f32 1.442695, %v95_v28  ;;  %v111_v39 = vsub.f32 %v355_v9, %v405_v24 }
   0xb   :  { %251 = vpow2.f32 %v97_v31  ;;  %v105_v37 = vmul.f32 1.442695, %v96_v29  ;;  %v112_v40 = vmul.f32 1.442695, %v107_v30  ;;  %v114_v41 = vmul.f32 1.442695, %v108_v33 }
   0xc   :  { %253 = vpow2.f32 %v99_v32  ;;  %v116_v43 = vmul.f32 1.442695, %v109_v36  ;;  %v128_v44 = vsub.f32 %v369_v13, %v396_v21  ;;  %v118_v45 = vmul.f32 1.442695, %v110_v38  ;;  %v60_v36 = vld [vmem:[%s482_s1] sm:$0xff]  ;;  %v62_v38 = vld [vmem:[%s482_s1 + $0x10] sm:$0xff] }
   0xd   :  { %255 = vpow2.f32 %v101_v34  ;;  %v129_v46 = vsub.f32 %v374_v14, %v399_v22  ;;  %v120_v47 = vmul.f32 1.442695, %v111_v39  ;;  %v130_v48 = vsub.f32 %v385_v18, %v402_v23  ;;  %v63_v39 = vld [vmem:[%s482_s1 + $0x18] sm:$0xff] }
   0xe   :  { %257 = vpow2.f32 %v103_v35  ;;  %v131_v49 = vsub.f32 %v390_v19, %v405_v24  ;;  %v132_v50 = vmul.f32 1.442695, %v127_v42  ;;  %v134_v51 = vmul.f32 1.442695, %v128_v44 }
   0xf   :  { %259 = vpow2.f32 %v105_v37  ;;  %v136_v52 = vmul.f32 1.442695, %v129_v46  ;;  %v138_v53 = vmul.f32 1.442695, %v130_v48  ;;  %v61_v37 = vld [vmem:[%s482_s1 + $0x8] sm:$0xff]  ;;  %vm162_vm0 = vcmp.eq.s32.totalorder %v60_v36, 1 }
  0x10   :  { %261 = vpow2.f32 %v112_v40  ;;  %v140_v54 = vmul.f32 1.442695, %v131_v49  ;;  %v64_v40 = vld [vmem:[%s482_s1 + $0x20] sm:$0xff]  ;;  %vm163_vm1 = vcmp.eq.s32.totalorder %v61_v37, 1  ;;  %vm164_vm2 = vcmp.eq.s32.totalorder %v62_v38, 1 }
  0x11   :  { %263 = vpow2.f32 %v114_v41  ;;  %vm165_vm3 = vcmp.eq.s32.totalorder %v63_v39, 1  ;;  %vm166_vm4 = vcmp.eq.s32.totalorder %v64_v40, 1  ;;  %v167_v41 = vsel %vm162_vm0, %v335_v5, %v310_v0 }
  0x12   :  { %265 = vpow2.f32 %v116_v43  ;;  %vm172_vm5 = vcmp.eq.s32.totalorder %v60_v36, 2  ;;  %vm173_vm6 = vcmp.eq.s32.totalorder %v61_v37, 2  ;;  %vm182_vm7 = vcmp.ge.s32.totalorder %v60_v36, 0 }
  0x13   :  { %267 = vpow2.f32 %v118_v45  ;;  %v168_v42 = vsel %vm163_vm1, %v340_v6, %v315_v1  ;;  %vm174_vm8 = vcmp.eq.s32.totalorder %v62_v38, 2  ;;  %vm175_vm9 = vcmp.eq.s32.totalorder %v63_v39, 2 }
  0x14   :  { %269 = vpow2.f32 %v120_v47  ;;  %vm183_vm10 = vcmp.ge.s32.totalorder %v61_v37, 0  ;;  %v169_v43 = vsel %vm164_vm2, %v345_v7, %v320_v2  ;;  %v170_v44 = vsel %vm165_vm3, %v350_v8, %v325_v3 }
  0x15   :  { %271 = vpow2.f32 %v132_v50  ;;  %v171_v45 = vsel %vm166_vm4, %v355_v9, %v330_v4  ;;  %vm184_vm11 = vcmp.ge.s32.totalorder %v62_v38, 0  ;;  %vm176_vm12 = vcmp.eq.s32.totalorder %v64_v40, 2 }
  0x16   :  { %273 = vpow2.f32 %v134_v51  ;;  %v177_v5 = vsel %vm172_vm5, %v364_v12, %v167_v41  ;;  %vm185_vm13 = vcmp.ge.s32.totalorder %v63_v39, 0  ;;  %v291_v46 = vmov 0.0  }
  0x17   :  { %275 = vpow2.f32 %v136_v52  ;;  %v245_v1 = vsel %vm182_vm7, 1.0, %v291_v46  ;;  %v178_v48 = vsel %vm173_vm6, %v369_v13, %v168_v42  ;;  %vm186_vm14 = vcmp.ge.s32.totalorder %v64_v40, 0 }
  0x18   :  { %v252_v55 = vpop.eup %251  ;;  %277 = vpow2.f32 %v138_v53  ;;  %v246_v2 = vsel %vm183_vm10, 1.0, %v291_v46  ;;  %v179_v4 = vsel %vm174_vm8, %v374_v14, %v169_v43  ;;  %v180_v8 = vsel %vm175_vm9, %v385_v18, %v170_v44 }
  0x19   :  { %v254_v56 = vpop.eup %253  ;;  %279 = vpow2.f32 %v140_v54  ;;  %v247_v9 = vsel %vm184_vm11, 1.0, %v291_v46  ;;  %v248_v51 = vsel %vm185_vm13, 1.0, %v291_v46  ;;  %v197_v52 = vmul.f32 0.00023674243, %v245_v1 }
  0x1a   :  { %v256_v57 = vpop.eup %255 }
  0x1b   :  { %v258_v58 = vpop.eup %257 }
  0x1c   :  { %v260_v59 = vpop.eup %259 }
  0x1d   :  { %v262_v60 = vpop.eup %261 }
  0x1e   :  { %v264_v61 = vpop.eup %263  ;;  %v122_v63 = vadd.f32 %v262_v60, %v252_v55  ;;  %v249_v55 = vsel %vm186_vm14, 1.0, %v291_v46  ;;  %v181_v60 = vsel %vm176_vm12, %v390_v19, %v171_v45 }
  0x1f   :  { %v266_v62 = vpop.eup %265  ;;  %v123_v11 = vadd.f32 %v264_v61, %v254_v56  ;;  %v198_v56 = vmul.f32 0.00023674243, %v246_v2 }
  0x20   :  { %v268_v10 = vpop.eup %267  ;;  %v124_v16 = vadd.f32 %v266_v62, %v256_v57 }
  0x21   :  { %v270_v15 = vpop.eup %269  ;;  %v125_v25 = vadd.f32 %v268_v10, %v258_v58  ;;  %v199_v58 = vmul.f32 0.00023674243, %v247_v9 }
  0x22   :  { %v272_v17 = vpop.eup %271  ;;  %v126_v27 = vadd.f32 %v270_v15, %v260_v59 }
  0x23   :  { %v274_v26 = vpop.eup %273  ;;  %v142_v28 = vadd.f32 %v272_v17, %v122_v63 }
  0x24   :  { %v276_v29 = vpop.eup %275  ;;  %v143_v30 = vadd.f32 %v274_v26, %v123_v11  ;;  %v201_v11 = vmul.f32 0.00023674243, %v249_v55 }
  0x25   :  { %v278_v31 = vpop.eup %277  ;;  %v144_v32 = vadd.f32 %v276_v29, %v124_v16  ;;  %281 = vlog2.f32 %v142_v28 }
  0x26   :  { %v280_v33 = vpop.eup %279  ;;  %v145_v34 = vadd.f32 %v278_v31, %v125_v25  ;;  %283 = vlog2.f32 %v143_v30 }
  0x27   :  { %v146_v35 = vadd.f32 %v280_v33, %v126_v27  ;;  %285 = vlog2.f32 %v144_v32 }
  0x28   :  { %287 = vlog2.f32 %v145_v34 }
  0x29   :  { %289 = vlog2.f32 %v146_v35 }
  0x32   :  { %v282_v0 = vpop.eup %281 }
  0x33   :  { %v284_v6 = vpop.eup %283  ;;  %v148_v47 = vmul.f32 0.6931472, %v282_v0 }
  0x34   :  { %v286_v7 = vpop.eup %285  ;;  %v150_v3 = vmul.f32 0.6931472, %v284_v6 }
  0x35   :  { %v288_v12 = vpop.eup %287  ;;  %v152_v49 = vmul.f32 0.6931472, %v286_v7  ;;  %v157_v50 = vadd.f32 %v148_v47, %v393_v20  ;;  %v200_v20 = vmul.f32 0.00023674243, %v248_v51 }
  0x36   :  { %v290_v13 = vpop.eup %289  ;;  %v154_v53 = vmul.f32 0.6931472, %v288_v12  ;;  %v158_v54 = vadd.f32 %v150_v3, %v396_v21 }
  0x37   :  { %v156_v57 = vmul.f32 0.6931472, %v290_v13  ;;  %v159_v14 = vadd.f32 %v152_v49, %v399_v22  ;;  %v202_v18 = vsub.f32 %v157_v50, %v177_v5 }
  0x38   :  { %v160_v59 = vadd.f32 %v154_v53, %v402_v23  ;;  %v203_v61 = vsub.f32 %v158_v54, %v178_v48 }
  0x39   :  { %v161_v62 = vadd.f32 %v156_v57, %v405_v24  ;;  %v204_v63 = vsub.f32 %v159_v14, %v179_v4  ;;  %v207_v10 = vmul.f32 %v202_v18, %v197_v52 }
  0x3a   :  { %v205_v21 = vsub.f32 %v160_v59, %v180_v8  ;;  %v208_v15 = vmul.f32 %v203_v61, %v198_v56 }
  0x3b   :  { %v206_v16 = vsub.f32 %v161_v62, %v181_v60  ;;  %v209_v17 = vmul.f32 %v204_v63, %v199_v58 }
  0x3c   :  { %v210_v25 = vmul.f32 %v205_v21, %v200_v20  ;;  %v213_v22 = vadd.f32 %v208_v15, %v207_v10 }
  0x3d   :  { %v211_v26 = vmul.f32 %v206_v16, %v201_v11 }
  0x3e   :  { %v214_v27 = vadd.f32 %v213_v22, %v209_v17 }
  0x40   :  { %v215_v28 = vadd.f32 %v214_v27, %v210_v25 }
  0x42   :  { %v216_v23 = vadd.f32 %v215_v28, %v211_v26 }
  0x44   :  { %218 = vst [vmem:[%s483_s2] sm:$0xff] %v216_v23 }

// kernel: tplinker_loss.3
= control target key start
LH: loop header
LB: loop body
LE: loop exit
PB: predicated region body
PF: predicated region fallthrough
CT: control target
= control target key end

     0   :  { %v142_v23 = vmov 0.0   ;;  %s179_s0 = inlined_call_operand.vmem [shape: f32[2,16,128], index: 0, kind: input, shape index: {}]   ;;  %s180_s1 = inlined_call_operand.vmem [shape: s32[16,128], index: 1, kind: input, shape index: {}]   ;;  %s181_s2 = inlined_call_operand.vmem [shape: f32[1,8,128], index: 2, kind: output, shape index: {}]  }
   0x1   :  { %v62_v0 = vld [vmem:[%s179_s0] sm:$0xff]  ;;  %v63_v1 = vld [vmem:[%s179_s0 + $0x8] sm:$0xff]  ;;  %v125_v2 = vld [vmem:[%s179_s0 + $0x10] sm:$0xff] }
   0x2   :  { %v126_v3 = vld [vmem:[%s179_s0 + $0x18] sm:$0xff]  ;;  %v67_v4 = vmax.f32 %v62_v0, %v125_v2  ;;  %v60_v20 = vld [vmem:[%s180_s1] sm:$0xff]  ;;  %v61_v21 = vld [vmem:[%s180_s1 + $0x8] sm:$0xff] }
   0x3   :  { %v68_v5 = vmax.f32 %v63_v1, %v126_v3  ;;  %vm93_vm0 = vcmp.ge.s32.totalorder %v60_v20, 0  ;;  %vm94_vm1 = vcmp.ge.s32.totalorder %v61_v21, 0  ;;  %vm89_vm2 = vcmp.eq.s32.totalorder %v60_v20, 1 }
   0x4   :  { %v69_v6 = vsub.f32 %v62_v0, %v67_v4  ;;  %v75_v8 = vsub.f32 %v125_v2, %v67_v4  ;;  %vm90_vm3 = vcmp.eq.s32.totalorder %v61_v21, 1  ;;  %v127_v24 = vsel %vm93_vm0, 1.0, %v142_v23 }
   0x5   :  { %v70_v7 = vsub.f32 %v63_v1, %v68_v5  ;;  %v76_v9 = vsub.f32 %v126_v3, %v68_v5  ;;  %v128_v27 = vsel %vm94_vm1, 1.0, %v142_v23  ;;  %v91_v29 = vsel %vm89_vm2, %v125_v2, %v62_v0 }
   0x6   :  { %v71_v10 = vmul.f32 1.442695, %v69_v6  ;;  %v77_v12 = vmul.f32 1.442695, %v75_v8  ;;  %v92_v31 = vsel %vm90_vm3, %v126_v3, %v63_v1  ;;  %v99_v32 = vmul.f32 0.0009469697, %v127_v24 }
   0x7   :  { %v73_v11 = vmul.f32 1.442695, %v70_v7  ;;  %v79_v13 = vmul.f32 1.442695, %v76_v9  ;;  %v100_v34 = vmul.f32 0.0009469697, %v128_v27 }
   0x8   :  { %130 = vpow2.f32 %v71_v10 }
   0x9   :  { %132 = vpow2.f32 %v73_v11 }
   0xa   :  { %134 = vpow2.f32 %v77_v12 }
   0xb   :  { %136 = vpow2.f32 %v79_v13 }
  0x15   :  { %v131_v14 = vpop.eup %130 }
  0x16   :  { %v133_v15 = vpop.eup %132 }
  0x17   :  { %v135_v16 = vpop.eup %134 }
  0x18   :  { %v137_v17 = vpop.eup %136  ;;  %v81_v18 = vadd.f32 %v135_v16, %v131_v14 }
  0x19   :  { %v82_v19 = vadd.f32 %v137_v17, %v133_v15 }
  0x1a   :  { %138 = vlog2.f32 %v81_v18 }
  0x1b   :  { %140 = vlog2.f32 %v82_v19 }
  0x27   :  { %v139_v22 = vpop.eup %138 }
  0x28   :  { %v141_v25 = vpop.eup %140  ;;  %v84_v26 = vmul.f32 0.6931472, %v139_v22 }
  0x29   :  { %v86_v28 = vmul.f32 0.6931472, %v141_v25 }
  0x2a   :  { %v87_v30 = vadd.f32 %v84_v26, %v67_v4 }
  0x2b   :  { %v88_v33 = vadd.f32 %v86_v28, %v68_v5 }
  0x2c   :  { %v101_v35 = vsub.f32 %v87_v30, %v91_v29 }
  0x2d   :  { %v102_v36 = vsub.f32 %v88_v33, %v92_v31 }
  0x2e   :  { %v103_v37 = vmul.f32 %v101_v35, %v99_v32 }
  0x2f   :  { %v104_v38 = vmul.f32 %v102_v36, %v100_v34 }
  0x31   :  { %v106_v39 = vadd.f32 %v104_v38, %v103_v37 }
  0x33   :  { %108 = vst [vmem:[%s181_s2] sm:$0xff] %v106_v39 }

</bundles_post_ra>
